<compile_context>
chip_gen: v7x
topology: tpu7x:2x2x1
jax: 0.10.0
libtpu: 0.0.40
codegen_flags: <defaults>
</compile_context>

<pallas_src>
import jax
import jax.numpy as jnp
import numpy as np
from jax import lax
from jax.experimental import pallas as pl
from jax.experimental.pallas import tpu as pltpu


# ----------------------------- kernel ---------------------------------------
def _make_pblstm_kernel(Tc, B, H, unroll):
    """Kernel body for one (direction, time-chunk) grid step."""
    G3 = 3 * H

    def kernel(x_ref,      # (Tc*B, D)   time-major input chunk
               w_ih_ref,   # (D, 4H)     this direction's input->gate weights ([i,f,o,g])
               w_hh_ref,   # (H, 4H)     this direction's hidden->gate weights
               b_ref,      # (1, 4H)     combined b_ih + b_hh
               out_ref,    # (Tc, B, H)  this direction's hidden outputs for the chunk
               g_ref,      # scratch (Tc*B, 4H)  per-chunk input-gate terms
               h_ref,      # scratch (B, H)      recurrent h, carried across chunks
               c_ref):     # scratch (B, H)      recurrent c, carried across chunks
        d = pl.program_id(0)      # 0 = forward, 1 = backward
        c = pl.program_id(1)      # sequential time-chunk index

        # torch passes h=None, c=None on the first step -> zeros
        @pl.when(c == 0)
        def _():
            h_ref[...] = jnp.zeros_like(h_ref)
            c_ref[...] = jnp.zeros_like(c_ref)

        # Hoisted per-chunk input->gate projection (one MXU pass, bias folded).
        g_ref[...] = (jnp.dot(x_ref[...], w_ih_ref[...],
                              preferred_element_type=jnp.float32)
                      + b_ref[...])

        w_hh = w_hh_ref[...]      # (H, 4H) f32, resident across the chunk

        def step(s, carry):
            h, c_state = carry    # recurrent state stays in vregs, not VMEM
            # forward walks the chunk 0..Tc-1, backward walks it Tc-1..0
            tau = (1 - d) * s + d * (Tc - 1 - s)
            row = pl.multiple_of(tau * B, B)
            gates = g_ref[pl.ds(row, B), :] + jnp.dot(
                h, w_hh, preferred_element_type=jnp.float32)
            # gate order [i, f, o, g]: one contiguous sigmoid slab (3H) and one
            # tanh slab (H) instead of sigmoid+tanh over the full 4H.
            sig = jax.nn.sigmoid(gates[:, :G3])
            g_gate = jnp.tanh(gates[:, G3:])
            i_gate = sig[:, 0:H]
            f_gate = sig[:, H:2 * H]
            o_gate = sig[:, 2 * H:G3]
            c_new = f_gate * c_state + i_gate * g_gate
            h_new = o_gate * jnp.tanh(c_new)
            # hidden produced while consuming local time tau belongs to output
            # position tau (both directions); one dense (B, H) store per step.
            out_ref[tau, :, :] = h_new.astype(out_ref.dtype)
            return (h_new, c_new)

        h_fin, c_fin = lax.fori_loop(0, Tc, step, (h_ref[...], c_ref[...]),
                                     unroll=unroll)
        h_ref[...] = h_fin
        c_ref[...] = c_fin

    return kernel


# ----------------------------- wrapper ---------------------------------------
def _permute_gates(w):
    """Reorder gate columns from torch's [i, f, g, o] to [i, f, o, g]."""
    i, f, g, o = jnp.split(w, 4, axis=-1)
    return jnp.concatenate([i, f, o, g], axis=-1)


def _choose_time_chunk(T, B, D, H, budget_bytes=8 * 1024 * 1024):
    """Largest divisor of T whose per-chunk VMEM footprint fits the budget.

    Budget is sized with headroom for v7x (64 MiB physical / 32 MiB default
    scoped VMEM), counting double-buffered x/out blocks plus the gate scratch.
    """
    def cost(tc):
        x_blk = tc * B * D * 4 * 2          # double-buffered input chunk
        out_blk = tc * B * H * 4 * 2        # double-buffered output chunk
        gates = tc * B * 4 * H * 4          # gate scratch
        return x_blk + out_blk + gates

    best = 1
    for tc in range(1, T + 1):
        if T % tc == 0 and cost(tc) <= budget_bytes:
            best = tc
    return best


def pblstm_forward(x, params, *, time_chunk=None, proj_dtype=jnp.float32):
    """x: (B, T, D) float32; returns (B, T, 2*H) float32."""
    B, T, D = x.shape
    H = params["wf_hh"].shape[0]

    Tc = time_chunk if time_chunk is not None else _choose_time_chunk(T, B, D, H)
    assert T % Tc == 0, "time_chunk must divide T"
    nc = T // Tc
    assert (Tc * B) % 8 == 0, "time_chunk * batch must be a multiple of 8"

    # Per-direction weights, gate columns permuted to [i, f, o, g].
    w_ih = jnp.stack([_permute_gates(params["wf_ih"]),
                      _permute_gates(params["wb_ih"])]).astype(proj_dtype)   # (2, D, 4H)
    w_hh = jnp.stack([_permute_gates(params["wf_hh"]),
                      _permute_gates(params["wb_hh"])]).astype(jnp.float32)  # (2, H, 4H)
    b = jnp.stack([_permute_gates(params["bf"]),
                   _permute_gates(params["bb"])]).astype(jnp.float32)        # (2, 1, 4H)

    # Time-major, flattened input for per-chunk (Tc*B, D) @ (D, 4H) projections.
    x_flat = jnp.transpose(x, (1, 0, 2)).reshape(T * B, D).astype(proj_dtype)

    def chunk_idx(d, c):
        # forward consumes chunks 0..nc-1; backward consumes them nc-1..0
        return (1 - d) * c + d * (nc - 1 - c)

    kernel = _make_pblstm_kernel(Tc, B, H, unroll=min(Tc, 8))

    out_raw = pl.pallas_call(
        kernel,
        out_shape=jax.ShapeDtypeStruct((2, T, B, H), jnp.float32),
        grid_spec=pltpu.PrefetchScalarGridSpec(
            num_scalar_prefetch=0,
            grid=(2, nc),                                   # (direction, time-chunk)
            in_specs=[
                pl.BlockSpec((Tc * B, D), lambda d, c: (chunk_idx(d, c), 0)),
                pl.BlockSpec((None, D, 4 * H), lambda d, c: (d, 0, 0)),
                pl.BlockSpec((None, H, 4 * H), lambda d, c: (d, 0, 0)),
                pl.BlockSpec((None, 1, 4 * H), lambda d, c: (d, 0, 0)),
            ],
            out_specs=pl.BlockSpec((None, Tc, B, H),
                                   lambda d, c: (d, chunk_idx(d, c), 0, 0)),
            scratch_shapes=[
                pltpu.VMEM((Tc * B, 4 * H), jnp.float32),   # per-chunk gate terms
                pltpu.VMEM((B, H), jnp.float32),            # h, carried across chunks
                pltpu.VMEM((B, H), jnp.float32),            # c, carried across chunks
            ],
        ),
        compiler_params=pltpu.CompilerParams(
            dimension_semantics=("parallel", "arbitrary"),  # direction -> 2 TCs on v7x
            vmem_limit_bytes=32 * 1024 * 1024,
        ),
    )(x_flat, w_ih, w_hh, b)

    # (2, T, B, H) -> (B, T, 2H).  TODO(synk): let the next layer consume the
    # time-major layout directly to drop this extra HBM pass.
    return jnp.transpose(out_raw, (2, 1, 0, 3)).reshape(B, T, 2 * H)


# ----------------------------- reference ------------------------------------
def _lstm_ref(x, w_ih, w_hh, b):
    """Pure-JAX unidirectional LSTM (gate order [i, f, g, o]); (B,T,D)->(B,T,H)."""
    B, _, _ = x.shape
    H = w_hh.shape[0]

    def cell(carry, xt):
        h, c = carry
        gates = xt @ w_ih + h @ w_hh + b
        i, f, g, o = jnp.split(gates, 4, axis=-1)
        i, f, o = jax.nn.sigmoid(i), jax.nn.sigmoid(f), jax.nn.sigmoid(o)
        g = jnp.tanh(g)
        c = f * c + i * g
        h = o * jnp.tanh(c)
        return (h, c), h

    init = (jnp.zeros((B, H), jnp.float32), jnp.zeros((B, H), jnp.float32))
    _, hs = lax.scan(cell, init, jnp.swapaxes(x, 0, 1))
    return jnp.swapaxes(hs, 0, 1)


def pblstm_reference(x, params):
    fwd = _lstm_ref(x, params["wf_ih"], params["wf_hh"], params["bf"])
    bwd = _lstm_ref(x[:, ::-1, :], params["wb_ih"], params["wb_hh"], params["bb"])
    return jnp.concatenate([fwd, bwd[:, ::-1, :]], axis=-1)


# ----------------------------- main -----------------------------------------
if __name__ == "__main__":
    # Small validation config (correctness only; tune/benchmark at H multiple
    # of 128, e.g. H=256, per the production notes above).
    B, T = 8, 8
    input_dim = 32
    output_dim = 128
    H = output_dim // 4            # hidden size of each LSTMCell

    key = jax.random.PRNGKey(0)
    ks = jax.random.split(key, 7)
    bound = 1.0 / np.sqrt(H)       # torch-style uniform init
    u = lambda k, shape: jax.random.uniform(k, shape, jnp.float32, -bound, bound)

    params = {
        "wf_ih": u(ks[0], (input_dim, 4 * H)),
        "wf_hh": u(ks[1], (H, 4 * H)),
        "bf":    u(ks[2], (1, 4 * H)),        # combined b_ih + b_hh
        "wb_ih": u(ks[3], (input_dim, 4 * H)),
        "wb_hh": u(ks[4], (H, 4 * H)),
        "bb":    u(ks[5], (1, 4 * H)),
    }
    x = jax.random.normal(ks[6], (B, T, input_dim), jnp.float32)

    ref = jax.block_until_ready(pblstm_reference(x, params))

    # 1) f32, multi-chunk grid (nc=2): exercises chunk-to-chunk h/c carry.
    out = jax.block_until_ready(pblstm_forward(x, params, time_chunk=4))
    assert out.shape == (B, T, 2 * H), out.shape
    np.testing.assert_allclose(np.asarray(out), np.asarray(ref),
                               rtol=1e-5, atol=1e-5)

    # 2) f32, auto chunk size (single chunk path).
    out_auto = jax.block_until_ready(pblstm_forward(x, params))
    np.testing.assert_allclose(np.asarray(out_auto), np.asarray(ref),
                               rtol=1e-5, atol=1e-5)

    # 3) bf16 input projection (production setting), f32 recurrence.
    out_bf16 = jax.block_until_ready(
        pblstm_forward(x, params, time_chunk=2, proj_dtype=jnp.bfloat16))
    np.testing.assert_allclose(np.asarray(out_bf16), np.asarray(ref),
                               rtol=3e-2, atol=3e-2)

    print("KERNEL_OK")
</pallas_src>

<mosaic_0001>
module attributes {stable_mosaic.version = 11 : i64} {
  func.func @kernel(%arg0: i32, %arg1: i32, %arg2: memref<32x32xf32, #tpu.memory_space<vmem>>, %arg3: memref<1x32x128xf32, #tpu.memory_space<vmem>>, %arg4: memref<1x32x128xf32, #tpu.memory_space<vmem>>, %arg5: memref<1x1x128xf32, #tpu.memory_space<vmem>>, %arg6: memref<1x4x8x32xf32, #tpu.memory_space<vmem>>, %arg7: memref<32x128xf32, #tpu.memory_space<vmem>>, %arg8: memref<8x32xf32, #tpu.memory_space<vmem>>, %arg9: memref<8x32xf32, #tpu.memory_space<vmem>>) attributes {dimension_semantics = [#tpu.dimension_semantics<parallel>, #tpu.dimension_semantics<arbitrary>], iteration_bounds = array<i64: 2, 2>, scalar_prefetch = 0 : i64, scratch_operands = 3 : i64, tpu.core_type = #tpu.core_type<tc>, window_params = [{transform_indices = @transform_0, window_bounds = array<i64: 32, 32>}, {transform_indices = @transform_1, window_bounds = array<i64: 1, 32, 128>}, {transform_indices = @transform_2, window_bounds = array<i64: 1, 32, 128>}, {transform_indices = @transform_3, window_bounds = array<i64: 1, 1, 128>}, {transform_indices = @transform_4, window_bounds = array<i64: 1, 4, 8, 32>}]} {
    %c0_i32 = arith.constant 0 : i32
    %0 = arith.cmpi eq, %arg1, %c0_i32 : i32
    %1 = arith.extui %0 : i1 to i32
    %c0_i32_0 = arith.constant 0 : i32
    %2 = arith.cmpi ne, %1, %c0_i32_0 : i32
    scf.if %2 {
      %cst_57 = arith.constant 0.000000e+00 : f32
      %142 = vector.broadcast %cst_57 : f32 to vector<8x32xf32>
      %c0_58 = arith.constant 0 : index
      %c0_59 = arith.constant 0 : index
      %143 = vector.load %arg8[%c0_58, %c0_59] : memref<8x32xf32, #tpu.memory_space<vmem>>, vector<8x32xf32>
      tpu.vector_store %arg8[%c0_58, %c0_59], %142 {strides = array<i32>} : memref<8x32xf32, #tpu.memory_space<vmem>>, vector<8x32xf32>,
      %cst_60 = arith.constant 0.000000e+00 : f32
      %144 = vector.broadcast %cst_60 : f32 to vector<8x32xf32>
      %c0_61 = arith.constant 0 : index
      %c0_62 = arith.constant 0 : index
      %145 = vector.load %arg9[%c0_61, %c0_62] : memref<8x32xf32, #tpu.memory_space<vmem>>, vector<8x32xf32>
      tpu.vector_store %arg9[%c0_61, %c0_62], %144 {strides = array<i32>} : memref<8x32xf32, #tpu.memory_space<vmem>>, vector<8x32xf32>,
    } else {
    }
    %c0 = arith.constant 0 : index
    %c0_1 = arith.constant 0 : index
    %3 = vector.load %arg2[%c0, %c0_1] : memref<32x32xf32, #tpu.memory_space<vmem>>, vector<32x32xf32>
    %c0_2 = arith.constant 0 : index
    %c0_3 = arith.constant 0 : index
    %c0_4 = arith.constant 0 : index
    %4 = vector.load %arg3[%c0_2, %c0_3, %c0_4] : memref<1x32x128xf32, #tpu.memory_space<vmem>>, vector<1x32x128xf32>
    %5 = vector.shape_cast %4 : vector<1x32x128xf32> to vector<32x128xf32>
    %cst = arith.constant dense<0.000000e+00> : vector<32x128xf32>
    %6 = tpu.matmul %3, %5, %cst {dimension_numbers = #tpu.dot_dimension_numbers<[1], [0], [0], [1], [0, 0, 1, 1], [], []>} : vector<32x32xf32>, vector<32x128xf32>, vector<32x128xf32> -> vector<32x128xf32>
    %c0_5 = arith.constant 0 : index
    %c0_6 = arith.constant 0 : index
    %c0_7 = arith.constant 0 : index
    %7 = vector.load %arg5[%c0_5, %c0_6, %c0_7] : memref<1x1x128xf32, #tpu.memory_space<vmem>>, vector<1x1x128xf32>
    %8 = vector.shape_cast %7 : vector<1x1x128xf32> to vector<1x128xf32>
    %9 = vector.broadcast %8 : vector<1x128xf32> to vector<32x128xf32>
    %10 = arith.addf %6, %9 : vector<32x128xf32>
    %c0_8 = arith.constant 0 : index
    %c0_9 = arith.constant 0 : index
    %11 = vector.load %arg7[%c0_8, %c0_9] : memref<32x128xf32, #tpu.memory_space<vmem>>, vector<32x128xf32>
    tpu.vector_store %arg7[%c0_8, %c0_9], %10 {strides = array<i32>} : memref<32x128xf32, #tpu.memory_space<vmem>>, vector<32x128xf32>,
    %c0_10 = arith.constant 0 : index
    %c0_11 = arith.constant 0 : index
    %c0_12 = arith.constant 0 : index
    %12 = vector.load %arg4[%c0_10, %c0_11, %c0_12] : memref<1x32x128xf32, #tpu.memory_space<vmem>>, vector<1x32x128xf32>
    %13 = vector.shape_cast %12 : vector<1x32x128xf32> to vector<32x128xf32>
    %c0_13 = arith.constant 0 : index
    %c0_14 = arith.constant 0 : index
    %14 = vector.load %arg8[%c0_13, %c0_14] : memref<8x32xf32, #tpu.memory_space<vmem>>, vector<8x32xf32>
    %c0_15 = arith.constant 0 : index
    %c0_16 = arith.constant 0 : index
    %15 = vector.load %arg9[%c0_15, %c0_16] : memref<8x32xf32, #tpu.memory_space<vmem>>, vector<8x32xf32>
    %c0_i32_17 = arith.constant 0 : i32
    %c1_i32 = arith.constant 1 : i32
    %16 = arith.subi %c1_i32, %arg0 : i32
    %17 = arith.muli %16, %c0_i32_17 : i32
    %c3_i32 = arith.constant 3 : i32
    %18 = arith.subi %c3_i32, %c0_i32_17 : i32
    %19 = arith.muli %arg0, %18 : i32
    %20 = arith.addi %17, %19 : i32
    %c8_i32 = arith.constant 8 : i32
    %21 = arith.muli %20, %c8_i32 : i32
    %22 = tpu.assume_multiple %21, 8 : i32
    %23 = arith.index_cast %22 : i32 to index
    %c0_18 = arith.constant 0 : index
    %24 = vector.load %arg7[%23, %c0_18] : memref<32x128xf32, #tpu.memory_space<vmem>>, vector<8x128xf32>
    %cst_19 = arith.constant dense<0.000000e+00> : vector<8x128xf32>
    %25 = tpu.matmul %14, %13, %cst_19 {dimension_numbers = #tpu.dot_dimension_numbers<[1], [0], [0], [1], [0, 0, 1, 1], [], []>} : vector<8x32xf32>, vector<32x128xf32>, vector<8x128xf32> -> vector<8x128xf32>
    %26 = arith.addf %24, %25 : vector<8x128xf32>
    %27 = vector.extract_strided_slice %26 {offsets = [0, 0], sizes = [8, 96], strides = [1, 1]} : vector<8x128xf32> to vector<8x96xf32>
    %28 = arith.negf %27 : vector<8x96xf32>
    %29 = math.exp %28 : vector<8x96xf32>
    %cst_20 = arith.constant 1.000000e+00 : f32
    %30 = vector.broadcast %cst_20 : f32 to vector<8x96xf32>
    %31 = arith.addf %30, %29 : vector<8x96xf32>
    %32 = arith.divf %30, %31 : vector<8x96xf32>
    %33 = vector.extract_strided_slice %26 {offsets = [0, 96], sizes = [8, 32], strides = [1, 1]} : vector<8x128xf32> to vector<8x32xf32>
    %34 = math.tanh %33 : vector<8x32xf32>
    %35 = vector.extract_strided_slice %32 {offsets = [0, 0], sizes = [8, 32], strides = [1, 1]} : vector<8x96xf32> to vector<8x32xf32>
    %36 = vector.extract_strided_slice %32 {offsets = [0, 32], sizes = [8, 32], strides = [1, 1]} : vector<8x96xf32> to vector<8x32xf32>
    %37 = vector.extract_strided_slice %32 {offsets = [0, 64], sizes = [8, 32], strides = [1, 1]} : vector<8x96xf32> to vector<8x32xf32>
    %38 = arith.mulf %36, %15 : vector<8x32xf32>
    %39 = arith.mulf %35, %34 : vector<8x32xf32>
    %40 = arith.addf %38, %39 : vector<8x32xf32>
    %41 = math.tanh %40 : vector<8x32xf32>
    %42 = arith.mulf %37, %41 : vector<8x32xf32>
    %c0_21 = arith.constant 0 : index
    %43 = arith.index_cast %20 : i32 to index
    %c0_22 = arith.constant 0 : index
    %c0_23 = arith.constant 0 : index
    %44 = vector.load %arg6[%c0_21, %43, %c0_22, %c0_23] : memref<1x4x8x32xf32, #tpu.memory_space<vmem>>, vector<1x1x8x32xf32>
    %45 = vector.shape_cast %44 : vector<1x1x8x32xf32> to vector<8x32xf32>
    %46 = vector.shape_cast %42 : vector<8x32xf32> to vector<1x1x8x32xf32>
    tpu.vector_store %arg6[%c0_21, %43, %c0_22, %c0_23], %46 {strides = array<i32>} : memref<1x4x8x32xf32, #tpu.memory_space<vmem>>, vector<1x1x8x32xf32>,
    %c1_i32_24 = arith.constant 1 : i32
    %c1_i32_25 = arith.constant 1 : i32
    %47 = arith.subi %c1_i32_25, %arg0 : i32
    %48 = arith.muli %47, %c1_i32_24 : i32
    %c3_i32_26 = arith.constant 3 : i32
    %49 = arith.subi %c3_i32_26, %c1_i32_24 : i32
    %50 = arith.muli %arg0, %49 : i32
    %51 = arith.addi %48, %50 : i32
    %c8_i32_27 = arith.constant 8 : i32
    %52 = arith.muli %51, %c8_i32_27 : i32
    %53 = tpu.assume_multiple %52, 8 : i32
    %54 = arith.index_cast %53 : i32 to index
    %c0_28 = arith.constant 0 : index
    %55 = vector.load %arg7[%54, %c0_28] : memref<32x128xf32, #tpu.memory_space<vmem>>, vector<8x128xf32>
    %cst_29 = arith.constant dense<0.000000e+00> : vector<8x128xf32>
    %56 = tpu.matmul %42, %13, %cst_29 {dimension_numbers = #tpu.dot_dimension_numbers<[1], [0], [0], [1], [0, 0, 1, 1], [], []>} : vector<8x32xf32>, vector<32x128xf32>, vector<8x128xf32> -> vector<8x128xf32>
    %57 = arith.addf %55, %56 : vector<8x128xf32>
    %58 = vector.extract_strided_slice %57 {offsets = [0, 0], sizes = [8, 96], strides = [1, 1]} : vector<8x128xf32> to vector<8x96xf32>
    %59 = arith.negf %58 : vector<8x96xf32>
    %60 = math.exp %59 : vector<8x96xf32>
    %cst_30 = arith.constant 1.000000e+00 : f32
    %61 = vector.broadcast %cst_30 : f32 to vector<8x96xf32>
    %62 = arith.addf %61, %60 : vector<8x96xf32>
    %63 = arith.divf %61, %62 : vector<8x96xf32>
    %64 = vector.extract_strided_slice %57 {offsets = [0, 96], sizes = [8, 32], strides = [1, 1]} : vector<8x128xf32> to vector<8x32xf32>
    %65 = math.tanh %64 : vector<8x32xf32>
    %66 = vector.extract_strided_slice %63 {offsets = [0, 0], sizes = [8, 32], strides = [1, 1]} : vector<8x96xf32> to vector<8x32xf32>
    %67 = vector.extract_strided_slice %63 {offsets = [0, 32], sizes = [8, 32], strides = [1, 1]} : vector<8x96xf32> to vector<8x32xf32>
    %68 = vector.extract_strided_slice %63 {offsets = [0, 64], sizes = [8, 32], strides = [1, 1]} : vector<8x96xf32> to vector<8x32xf32>
    %69 = arith.mulf %67, %40 : vector<8x32xf32>
    %70 = arith.mulf %66, %65 : vector<8x32xf32>
    %71 = arith.addf %69, %70 : vector<8x32xf32>
    %72 = math.tanh %71 : vector<8x32xf32>
    %73 = arith.mulf %68, %72 : vector<8x32xf32>
    %c0_31 = arith.constant 0 : index
    %74 = arith.index_cast %51 : i32 to index
    %c0_32 = arith.constant 0 : index
    %c0_33 = arith.constant 0 : index
    %75 = vector.load %arg6[%c0_31, %74, %c0_32, %c0_33] : memref<1x4x8x32xf32, #tpu.memory_space<vmem>>, vector<1x1x8x32xf32>
    %76 = vector.shape_cast %75 : vector<1x1x8x32xf32> to vector<8x32xf32>
    %77 = vector.shape_cast %73 : vector<8x32xf32> to vector<1x1x8x32xf32>
    tpu.vector_store %arg6[%c0_31, %74, %c0_32, %c0_33], %77 {strides = array<i32>} : memref<1x4x8x32xf32, #tpu.memory_space<vmem>>, vector<1x1x8x32xf32>,
    %c2_i32 = arith.constant 2 : i32
    %c1_i32_34 = arith.constant 1 : i32
    %78 = arith.subi %c1_i32_34, %arg0 : i32
    %79 = arith.muli %78, %c2_i32 : i32
    %c3_i32_35 = arith.constant 3 : i32
    %80 = arith.subi %c3_i32_35, %c2_i32 : i32
    %81 = arith.muli %arg0, %80 : i32
    %82 = arith.addi %79, %81 : i32
    %c8_i32_36 = arith.constant 8 : i32
    %83 = arith.muli %82, %c8_i32_36 : i32
    %84 = tpu.assume_multiple %83, 8 : i32
    %85 = arith.index_cast %84 : i32 to index
    %c0_37 = arith.constant 0 : index
    %86 = vector.load %arg7[%85, %c0_37] : memref<32x128xf32, #tpu.memory_space<vmem>>, vector<8x128xf32>
    %cst_38 = arith.constant dense<0.000000e+00> : vector<8x128xf32>
    %87 = tpu.matmul %73, %13, %cst_38 {dimension_numbers = #tpu.dot_dimension_numbers<[1], [0], [0], [1], [0, 0, 1, 1], [], []>} : vector<8x32xf32>, vector<32x128xf32>, vector<8x128xf32> -> vector<8x128xf32>
    %88 = arith.addf %86, %87 : vector<8x128xf32>
    %89 = vector.extract_strided_slice %88 {offsets = [0, 0], sizes = [8, 96], strides = [1, 1]} : vector<8x128xf32> to vector<8x96xf32>
    %90 = arith.negf %89 : vector<8x96xf32>
    %91 = math.exp %90 : vector<8x96xf32>
    %cst_39 = arith.constant 1.000000e+00 : f32
    %92 = vector.broadcast %cst_39 : f32 to vector<8x96xf32>
    %93 = arith.addf %92, %91 : vector<8x96xf32>
    %94 = arith.divf %92, %93 : vector<8x96xf32>
    %95 = vector.extract_strided_slice %88 {offsets = [0, 96], sizes = [8, 32], strides = [1, 1]} : vector<8x128xf32> to vector<8x32xf32>
    %96 = math.tanh %95 : vector<8x32xf32>
    %97 = vector.extract_strided_slice %94 {offsets = [0, 0], sizes = [8, 32], strides = [1, 1]} : vector<8x96xf32> to vector<8x32xf32>
    %98 = vector.extract_strided_slice %94 {offsets = [0, 32], sizes = [8, 32], strides = [1, 1]} : vector<8x96xf32> to vector<8x32xf32>
    %99 = vector.extract_strided_slice %94 {offsets = [0, 64], sizes = [8, 32], strides = [1, 1]} : vector<8x96xf32> to vector<8x32xf32>
    %100 = arith.mulf %98, %71 : vector<8x32xf32>
    %101 = arith.mulf %97, %96 : vector<8x32xf32>
    %102 = arith.addf %100, %101 : vector<8x32xf32>
    %103 = math.tanh %102 : vector<8x32xf32>
    %104 = arith.mulf %99, %103 : vector<8x32xf32>
    %c0_40 = arith.constant 0 : index
    %105 = arith.index_cast %82 : i32 to index
    %c0_41 = arith.constant 0 : index
    %c0_42 = arith.constant 0 : index
    %106 = vector.load %arg6[%c0_40, %105, %c0_41, %c0_42] : memref<1x4x8x32xf32, #tpu.memory_space<vmem>>, vector<1x1x8x32xf32>
    %107 = vector.shape_cast %106 : vector<1x1x8x32xf32> to vector<8x32xf32>
    %108 = vector.shape_cast %104 : vector<8x32xf32> to vector<1x1x8x32xf32>
    tpu.vector_store %arg6[%c0_40, %105, %c0_41, %c0_42], %108 {strides = array<i32>} : memref<1x4x8x32xf32, #tpu.memory_space<vmem>>, vector<1x1x8x32xf32>,
    %c3_i32_43 = arith.constant 3 : i32
    %c1_i32_44 = arith.constant 1 : i32
    %109 = arith.subi %c1_i32_44, %arg0 : i32
    %110 = arith.muli %109, %c3_i32_43 : i32
    %c3_i32_45 = arith.constant 3 : i32
    %111 = arith.subi %c3_i32_45, %c3_i32_43 : i32
    %112 = arith.muli %arg0, %111 : i32
    %113 = arith.addi %110, %112 : i32
    %c8_i32_46 = arith.constant 8 : i32
    %114 = arith.muli %113, %c8_i32_46 : i32
    %115 = tpu.assume_multiple %114, 8 : i32
    %116 = arith.index_cast %115 : i32 to index
    %c0_47 = arith.constant 0 : index
    %117 = vector.load %arg7[%116, %c0_47] : memref<32x128xf32, #tpu.memory_space<vmem>>, vector<8x128xf32>
    %cst_48 = arith.constant dense<0.000000e+00> : vector<8x128xf32>
    %118 = tpu.matmul %104, %13, %cst_48 {dimension_numbers = #tpu.dot_dimension_numbers<[1], [0], [0], [1], [0, 0, 1, 1], [], []>} : vector<8x32xf32>, vector<32x128xf32>, vector<8x128xf32> -> vector<8x128xf32>
    %119 = arith.addf %117, %118 : vector<8x128xf32>
    %120 = vector.extract_strided_slice %119 {offsets = [0, 0], sizes = [8, 96], strides = [1, 1]} : vector<8x128xf32> to vector<8x96xf32>
    %121 = arith.negf %120 : vector<8x96xf32>
    %122 = math.exp %121 : vector<8x96xf32>
    %cst_49 = arith.constant 1.000000e+00 : f32
    %123 = vector.broadcast %cst_49 : f32 to vector<8x96xf32>
    %124 = arith.addf %123, %122 : vector<8x96xf32>
    %125 = arith.divf %123, %124 : vector<8x96xf32>
    %126 = vector.extract_strided_slice %119 {offsets = [0, 96], sizes = [8, 32], strides = [1, 1]} : vector<8x128xf32> to vector<8x32xf32>
    %127 = math.tanh %126 : vector<8x32xf32>
    %128 = vector.extract_strided_slice %125 {offsets = [0, 0], sizes = [8, 32], strides = [1, 1]} : vector<8x96xf32> to vector<8x32xf32>
    %129 = vector.extract_strided_slice %125 {offsets = [0, 32], sizes = [8, 32], strides = [1, 1]} : vector<8x96xf32> to vector<8x32xf32>
    %130 = vector.extract_strided_slice %125 {offsets = [0, 64], sizes = [8, 32], strides = [1, 1]} : vector<8x96xf32> to vector<8x32xf32>
    %131 = arith.mulf %129, %102 : vector<8x32xf32>
    %132 = arith.mulf %128, %127 : vector<8x32xf32>
    %133 = arith.addf %131, %132 : vector<8x32xf32>
    %134 = math.tanh %133 : vector<8x32xf32>
    %135 = arith.mulf %130, %134 : vector<8x32xf32>
    %c0_50 = arith.constant 0 : index
    %136 = arith.index_cast %113 : i32 to index
    %c0_51 = arith.constant 0 : index
    %c0_52 = arith.constant 0 : index
    %137 = vector.load %arg6[%c0_50, %136, %c0_51, %c0_52] : memref<1x4x8x32xf32, #tpu.memory_space<vmem>>, vector<1x1x8x32xf32>
    %138 = vector.shape_cast %137 : vector<1x1x8x32xf32> to vector<8x32xf32>
    %139 = vector.shape_cast %135 : vector<8x32xf32> to vector<1x1x8x32xf32>
    tpu.vector_store %arg6[%c0_50, %136, %c0_51, %c0_52], %139 {strides = array<i32>} : memref<1x4x8x32xf32, #tpu.memory_space<vmem>>, vector<1x1x8x32xf32>,
    %c4_i32 = arith.constant 4 : i32
    %c0_53 = arith.constant 0 : index
    %c0_54 = arith.constant 0 : index
    %140 = vector.load %arg8[%c0_53, %c0_54] : memref<8x32xf32, #tpu.memory_space<vmem>>, vector<8x32xf32>
    tpu.vector_store %arg8[%c0_53, %c0_54], %135 {strides = array<i32>} : memref<8x32xf32, #tpu.memory_space<vmem>>, vector<8x32xf32>,
    %c0_55 = arith.constant 0 : index
    %c0_56 = arith.constant 0 : index
    %141 = vector.load %arg9[%c0_55, %c0_56] : memref<8x32xf32, #tpu.memory_space<vmem>>, vector<8x32xf32>
    tpu.vector_store %arg9[%c0_55, %c0_56], %133 {strides = array<i32>} : memref<8x32xf32, #tpu.memory_space<vmem>>, vector<8x32xf32>,
    return
  }
  func.func @transform_0(%arg0: i32, %arg1: i32) -> (i32, i32) {
    %c1_i32 = arith.constant 1 : i32
    %0 = arith.subi %c1_i32, %arg0 : i32
    %1 = arith.muli %0, %arg1 : i32
    %c1_i32_0 = arith.constant 1 : i32
    %2 = arith.subi %c1_i32_0, %arg1 : i32
    %3 = arith.muli %arg0, %2 : i32
    %4 = arith.addi %1, %3 : i32
    %c0_i32 = arith.constant 0 : i32
    %c0_i32_1 = arith.constant 0 : i32
    return %4, %c0_i32 : i32, i32
  }
  func.func @transform_1(%arg0: i32, %arg1: i32) -> (i32, i32, i32) {
    %c0_i32 = arith.constant 0 : i32
    %c0_i32_0 = arith.constant 0 : i32
    %c0_i32_1 = arith.constant 0 : i32
    return %arg0, %c0_i32, %c0_i32_0 : i32, i32, i32
  }
  func.func @transform_2(%arg0: i32, %arg1: i32) -> (i32, i32, i32) {
    %c0_i32 = arith.constant 0 : i32
    %c0_i32_0 = arith.constant 0 : i32
    %c0_i32_1 = arith.constant 0 : i32
    return %arg0, %c0_i32, %c0_i32_0 : i32, i32, i32
  }
  func.func @transform_3(%arg0: i32, %arg1: i32) -> (i32, i32, i32) {
    %c0_i32 = arith.constant 0 : i32
    %c0_i32_0 = arith.constant 0 : i32
    %c0_i32_1 = arith.constant 0 : i32
    return %arg0, %c0_i32, %c0_i32_0 : i32, i32, i32
  }
  func.func @transform_4(%arg0: i32, %arg1: i32) -> (i32, i32, i32, i32) {
    %c1_i32 = arith.constant 1 : i32
    %0 = arith.subi %c1_i32, %arg0 : i32
    %1 = arith.muli %0, %arg1 : i32
    %c1_i32_0 = arith.constant 1 : i32
    %2 = arith.subi %c1_i32_0, %arg1 : i32
    %3 = arith.muli %arg0, %2 : i32
    %4 = arith.addi %1, %3 : i32
    %c0_i32 = arith.constant 0 : i32
    %c0_i32_1 = arith.constant 0 : i32
    %c0_i32_2 = arith.constant 0 : i32
    return %arg0, %4, %c0_i32, %c0_i32_1 : i32, i32, i32, i32
  }
}

</mosaic_0001>

<bundles_post_ra>
// kernel: tpu_custom_call.1
= control target key start
LH: loop header
LB: loop body
LE: loop exit
PB: predicated region body
PF: predicated region fallthrough
CT: control target
= control target key end

     0   :  { %s1942_s0 = inlined_call_operand.vmem [shape: f32[64,32], index: 0, kind: input, shape index: {}]   ;;  %s1943_s1 = inlined_call_operand.vmem [shape: f32[2,32,128], index: 1, kind: input, shape index: {}]   ;;  %s1944_s2 = inlined_call_operand.hbm [shape: f32[2,32,128], index: 2, kind: input, shape index: {}]   ;;  %s1945_s3 = inlined_call_operand.vmem [shape: f32[2,1,128], index: 3, kind: input, shape index: {}]   ;;  %s1946_s4 = inlined_call_operand.hbm [shape: f32[2,8,8,32], index: 4, kind: output, shape index: {}]  }
   0x1   :  { %1956 = sst [smem:[#allocation17_spill]] %s1942_s0 }
   0x2   :  { %1957 = sst [smem:[#allocation18_spill]] %s1944_s2 }
   0x3   :  { %1958 = sst [smem:[#allocation19_spill]] %s1946_s4 }
   0x4   :  { %9 = vsyncpa [#allocation6], 0 }
   0x5   :  { %11 = vsyncpa [#allocation6 + $0x1], 0 }
   0x6   :  { %12 = vsyncpa [#allocation7], 0 }
   0x7   :  { %14 = vsyncpa [#allocation7 + $0x1], 0  ;;  %s1574_s15 = smov 0   ;;  %s1576_s16 = smov 0  }
   0x8   :  { %s1578_s17 = smov 0   ;;  %s1580_s18 = smov 0  }
   0x9   :  { %s1582_s19 = smov 0   ;;  %s1584_s20 = smov 0  }
   0xa   :  { %s1586_s21 = smov 0   ;;  %s1588_s22 = smov 0  }
   0xb   :  { %s1590_s23 = smov 0   ;;  %s1592_s24 = smov 0  }
   0xc   :  { %s1594_s25 = smov 0  }
   0xd LB: > { %1959 = sst [smem:[#allocation11_spill]] %s1514_s20  ;;  %s1947_s26 = sadd.s32 4294967295, %s1534_s25   ;;  %s1534_s25 = sphi %s1594_s25, %s20_s25   ;;  %s1530_s24 = sphi %s1592_s24, %s1984_s24   ;;  %s1526_s23 = sphi %s1590_s23, %s1983_s23   ;;  %s1522_s22 = sphi %s1588_s22, %s1982_s22   ;;  %s1518_s21 = sphi %s1586_s21, %s1981_s21   ;;  %s1514_s20 = sphi %s1584_s20, %s1980_s20   ;;  %s1510_s19 = sphi %s1582_s19, %s1989_s19   ;;  %s1506_s18 = sphi %s1580_s18, %s1988_s18   ;;  %s1502_s17 = sphi %s1578_s17, %s1987_s17   ;;  %s1498_s16 = sphi %s1576_s16, %s1986_s16   ;;  %s1494_s15 = sphi %s1574_s15, %s1985_s15  }
   0xe   : > { %1960 = sst [smem:[#allocation12_spill]] %s1526_s23  ;;  %s29_s28 = sadd.s32 1, %s1526_s23 }
   0xf   : > { %1961 = sst [smem:[#allocation13_spill]] %s1530_s24  ;;  %s32_s29 = sadd.s32 1, %s1530_s24 }
  0x10   : > { %p30_p0 = scmp.ge.s32.totalorder %s29_s28, 2  ;;  %s101_s30 = sadd.s32 1, %s1514_s20 }
  0x11   : > { %p108_p1 = scmp.ne.s32.totalorder %s1514_s20, %s1510_s19  ;;  %p109_p2 = scmp.eq.s32.totalorder %s1534_s25, 0 }
  0x12   : > { %s1991_s28 = smov (%p30_p0, %s29_s28), 0  ;;  %s1993_s29 = smov (!%p30_p0, %s32_s29), %s1530_s24 }
  0x13   : > { %1962 = sst [smem:[#allocation14_spill]] %s1991_s28  ;;  %p1638_p3 = por %p109_p2, %p108_p1 }
  0x14   : > { %p114_p4 = scmp.ne.s32.totalorder %s1510_s19, %s1506_s18  ;;  %p34_p5 = scmp.ge.s32.totalorder %s1993_s29, 2 }
  0x15   : > { %p115_p6 = scmp.eq.s32.totalorder %s1947_s26, 0  ;;  %s150_s6 = ssub.s32 1, %s1530_s24 }
  0x16   : > { %s152_s7 = ssub.s32 1, %s1526_s23  ;;  %s1995_s29 = smov (%p34_p5, %s1993_s29), 0 }
  0x17   : > { %1964 = sst [smem:[#allocation15_spill]] %s1995_s29  ;;  %p1649_p7 = por %p115_p6, %p114_p4 }
  0x18   : > { %s151_s9 = smul.u32 %s1526_s23, %s150_s6  ;;  %s98_s10 = ssub.s32 %s1530_s24, %s1995_s29 }
  0x19   : > { %s153_s11 = smul.u32 %s1530_s24, %s152_s7  ;;  %p99_p8 = scmp.eq.s32.totalorder %s98_s10, 0 }
  0x1a   : > { %s155_s12 = ssub.s32 1, %s1995_s29  ;;  %s157_s27 = ssub.s32 1, %s1991_s28 }
  0x1b   : > { %s154_s13 = sadd.s32 %s153_s11, %s151_s9  ;;  %s156_s14 = smul.u32 %s155_s12, %s1991_s28 }
  0x1c   : > { %s1660_s18 = scalar_select %p99_p8, %s1514_s20, %s101_s30  }
  0x1d   : > { %s165_s26 = sadd.s32 1, %s1502_s17  ;;  %s158_s4 = smul.u32 %s157_s27, %s1995_s29 }
  0x1e   : > { %1966 = sst [smem:[#allocation16_spill]] %s1660_s18  ;;  %p175_p9 = scmp.ne.s32.totalorder %s1502_s17, %s1498_s16 }
  0x1f   : > { %s1967_s0 = sadd.s32 4294967295, %s1534_s25   ;;  %p181_p11 = scmp.ne.s32.totalorder %s1498_s16, %s1494_s15 }
  0x20   : > { %p176_p10 = scmp.eq.s32.totalorder %s1967_s0, 3  ;;  %s159_s6 = sadd.s32 %s158_s4, %s156_s14 }
  0x21   : > { %s1968_s23 = sadd.s32 4294967294, %s1534_s25   ;;  %s161_s7 = ssub.s32 %s154_s13, %s159_s6 }
  0x22   : > { %p182_p12 = scmp.eq.s32.totalorder %s1968_s23, 3  ;;  %p1673_p13 = por %p176_p10, %p175_p9 }
  0x23   : > { %s162_s30 = sor.u32 %s161_s7, %s98_s10  ;;  %p1249_p2 = scmp.lt.s32.totalorder %s1534_s25, 4 }
  0x24   : > { %s1969_s9 = scalar_select %p1673_p13, 1, 0 }
  0x25   : > { %p1677_p0 = por %p182_p12, %p181_p11  ;;  %p163_p1 = scmp.eq.s32.totalorder %s162_s30, 0 }
  0x26   : > { %s229_s27 = sand.u32 1, %s1514_s20   ;;  %s1117_s12 = sshll.u32 %s1530_s24, 9 }
  0x27   : > { %s1970_s11 = scalar_select %p1677_p0, 1, 0 }
  0x28   : > { %s1684_s0 = scalar_select %p163_p1, %s1502_s17, %s165_s26  }
  0x29   : > { %s1081_s4 = sshll.u32 %s229_s27, 5  ;;  %s1971_s2 = sld [smem:[#allocation18_spill]] }
  0x2a   : > { %s233_s10 = scalar_lea.vmem [#allocation5], %s1081_s4  ;;  %p1696_p4 = pnand %p1249_p2, %p1638_p3 }
  0x2b   : > { %s240_s6 = sshll.u32 %s233_s10, 4  ;;  %s1701_s26 = scalar_lea.sflag [#allocation6], %s229_s27  ;;  %s1692_s6 = int_to_ptr.vmem [resolvable:$true] %s240_s6 }
  0x2c   : > { %p1384_p8 = pneg %p1696_p4 }
  0x2f   : > { %s1690_s13 = scalar_lea.hbm %s1971_s2, %s1117_s12  ;;  %s1387_s5 = scalar_lea.hbm %s1971_s2, 1024 }
  0x30   : > { %s1382_s30 = scalar_lea.hbm %s1690_s13, 512  ;;  %p1388_p3 = scmp.lt.u32.totalorder %s1690_s13, %s1971_s2 }
  0x31   : > { %p1383_p6 = scmp.ne.s32.totalorder %s1690_s13, %s1382_s30  ;;  %p1389_p11 = scmp.lt.u32.totalorder %s1387_s5, %s1382_s30 }
  0x32   : > { %p1391_p1 = scmp.lt.u32.totalorder %s1382_s30, %s1690_s13 }
  0x33   : > { %p1385_p9 = pnand %p1384_p8, %p1383_p6  ;;  %p1390_p12 = por %p1389_p11, %p1388_p3 }
  0x35   : > { %p1386_p10 = pneg %p1385_p9  ;;  %p1392_p2 = por %p1391_p1, %p1390_p12 }
  0x37   : > { %p1393_p5 = pnand %p1392_p2, %p1386_p10 }
  0x39   : > { %1396 = shalt.err (!%p1393_p5)
}
  0x3a   : > { %s1397_s27 = scalar_lea.vmem %s1692_s6, 512  ;;  %s1536_s10 = smov [#allocation5]  }
  0x3b   : > { %p1398_p6 = scmp.ne.s32.totalorder %s1692_s6, %s1397_s27  ;;  %s1402_s4 = sshll.u32 %s1536_s10, 4  ;;  %s1403_s4 = int_to_ptr.vmem [resolvable:$false] %s1402_s4 }
  0x3c   : > { %s1404_s12 = scalar_lea.vmem %s1403_s4, 1024  ;;  %p1405_p13 = scmp.lt.s32.totalorder %s1692_s6, %s1403_s4 }
  0x3d   : > { %p1400_p9 = pnand %p1398_p6, %p1384_p8  ;;  %p1406_p3 = scmp.lt.s32.totalorder %s1404_s12, %s1397_s27 }
  0x3f   : > { %p1401_p0 = pneg %p1400_p9  ;;  %p1407_p11 = por %p1406_p3, %p1405_p13 }
  0x41   : > { %p1408_p12 = pnand %p1407_p11, %p1401_p0 }
  0x43   : > { %1411 = shalt.err (!%p1408_p12)
}
  0x44   : > { %s1537_s30 = smov 128   ;;  %s1538_s5 = smov 8  }
  0x45   : > { %1244 = dma.hbm_to_vmem [thread:$0]  (!%p1696_p4), %s1690_s13, 512, %s1692_s6, %s1701_s26, %s1537_s30, %s1537_s30, %s1538_s5  }
  0x46   : > { %p254_p5 = scmp.lt.s32.totalorder %s1534_s25, 5  ;;  %p1973_p8 = scmp.ge.s32.totalorder %s1534_s25, 1 }
  0x48   : > { %p255_p10 = pnand %p1973_p8, %p254_p5 }
  0x49   : > { %s260_s14 = sand.u32 (!%p255_p10), 1, %s1510_s19  }
  0x4a   : > { %258 = sbr.rel (%p255_p10) target bundleno = 2948 (0xb84), region = 36  ;;  %s1085_s23 = sshll.u32 (!%p255_p10), %s260_s14, 5 }
  0x4b   : > { %s261_s27 = scalar_lea.sflag (!%p255_p10), [#allocation6], %s260_s14  ;;  %s1733_s10 = scalar_lea.vmem (!%p255_p10), [#allocation5], %s1085_s23 }
  0x51   : > { %1485 = dma.done.wait (%p1649_p7), %s261_s27, 512  }
  0x52   : > { %1487 = vsyncadd (%p1649_p7), %s261_s27, 4294966784  ;;  %s1951_s13 = sand.u32 1, %s1498_s16   ;;  %s1741_s6 = ssub.s32 1, %s1522_s22 }
  0x53   : > { %s1086_s7 = sshll.u32 %s1951_s13, 5  ;;  %s308_s26 = smul.u32 %s1518_s21, %s1741_s6 }
  0x54   : > { %s309_s4 = ssub.s32 1, %s1518_s21  ;;  %p323_p13 = scmp.lt.s32.totalorder %s1522_s22, 1 }
  0x55   : > { %s310_s12 = smul.u32 %s1522_s22, %s309_s4  ;;  %s1974_s24 = sld [smem:[#allocation17_spill]] }
  0x56   : > { %s1754_s5 = scalar_select %p323_p13, %s1522_s22, 1 }
  0x57   : > { %s311_s8 = sadd.s32 %s310_s12, %s308_s26  ;;  %s1770_s20 = scalar_lea.vmem [#allocation8], %s1086_s7 }
  0x58   : > { %s1750_s30 = sshll.u32 %s311_s8, 2  ;;  %s1118_s23 = sshll.u32 %s1754_s5, 5 }
  0x59   : > { %p313_p7 = scmp.lt.s32.totalorder %s1750_s30, 7  ;;  %s330_s13 = scalar_lea.vmem %s1945_s3, %s1754_s5 }
  0x5a   : > { %s327_s26 = scalar_lea.vmem %s1943_s1, %s1118_s23  ;;  %p1091_p0 = scmp.ne.s32.totalorder %s1518_s21, 0 }
  0x5b   : > { %s314_s14 = scalar_select %p313_p7, %s1750_s30, 7 }
  0x5c   : > { %340 = sbr.rel (%p1091_p0) target bundleno = 99 (0x63), region = 44  ;;  %vm341_vm0 = vcmask (!%p1091_p0), 261120   ;;  %v1539_v0 = vmov (!%p1091_p0), 0.0  }
  0x5d   : > { %s1088_s29 = sshll.u32 %s314_s14, 3  ;;  %342 = vst.msk [vmem:[#allocation3] sm:$0xff] (!%p1091_p0), %vm341_vm0, %v1539_v0  ;;  %343 = vst.msk [vmem:[#allocation4] sm:$0xff] (!%p1091_p0), %vm341_vm0, %v1539_v0 }
  0x5e   : > { %s1768_s18 = scalar_lea.vmem %s1974_s24, %s1088_s29 }
  0x63 PF: > { %v348_v1 = vld [vmem:[%s327_s26] sm:$0xff]  ;;  %v349_v2 = vld [vmem:[%s327_s26 + $0x8] sm:$0xff]  ;;  %v350_v3 = vld [vmem:[%s327_s26 + $0x10] sm:$0xff]  ;;  %vm359_vm1 = vcmask 261120   ;;  %v1540_v7 = vmov 0.0|0.0   ;;  %vm1541_vm2 = vmmov 0  }
  0x64   : > { %v1205_v4 = vpack.c.bf16 %v349_v2, %v348_v1  ;;  %v351_v5 = vld [vmem:[%s327_s26 + $0x18] sm:$0xff]  ;;  %v344_v6 = vld [vmem:[%s1768_s18] sm:$0xff]  ;;  %1213 = vmatprep.subr.bf16.mxu1 %v1540_v7  ;;  %v461_v9 = vld [vmem:[%s1733_s10] sm:$0xff]  ;;  %v1542_v10 = vmov 0.0   ;;  %s468_s24 = smul.u32 24, %s1522_s22  ;;  %s1543_s29 = smov 32  }
  0x65   : > { %v1209_v8 = vpack.c.bf16 %v351_v5, %v350_v3  ;;  %1155 = vmatprep.mubr.msk.f32.mxu0 %vm359_vm1, %v344_v6  ;;  %1169 = vmatprep.mubr.msk.f32.mxu1 %vm1541_vm2, %v1542_v10  ;;  %v462_v11 = vld [vmem:[%s1733_s10 + $0x8] sm:$0xff]  ;;  %v463_v12 = vld [vmem:[%s1733_s10 + $0x10] sm:$0xff]  ;;  %v464_v13 = vld [vmem:[%s1733_s10 + $0x18] sm:$0xff]  ;;  %s1104_s27 = sshll.u32 %s1741_s6, 1  ;;  %s798_s2 = smul.u32 24, %s1741_s6 }
  0x66   : > { %1206 = vmatprep.subr.bf16.mxu0 %v1205_v4  ;;  %v1782_v14 = vpack.c.bf16 %v462_v11, %v461_v9  ;;  %v1785_v15 = vpack.c.bf16 %v464_v13, %v463_v12  ;;  %v345_v16 = vld [vmem:[%s1768_s18 + $0x8] sm:$0xff]  ;;  %v346_v17 = vld [vmem:[%s1768_s18 + $0x10] sm:$0xff]  ;;  %v465_v18 = vld [vmem:[#allocation3] sm:$0xff]  ;;  %s469_s28 = scalar_lea.vmem [#allocation2], %s468_s24  ;;  %s578_s10 = scalar_lea.vmem %s1770_s20, %s468_s24 [#allocation8] }
  0x67   : > { %1208 = vmatpush3.bf16.msra.mxu0 %v1205_v4  ;;  %v347_v19 = vld [vmem:[%s1768_s18 + $0x18] sm:$0xff]  ;;  %v1092_v20 = vld [vmem:[%s330_s13] ss:$0 sm:$0xff]  ;;  %v466_v34 = vld [vmem:[#allocation4] sm:$0xff]  ;;  %s1544_s18 = smov 64   ;;  %s1100_s13 = sshll.u32 %s1522_s22, 1 }
  0x68   : > { %1210 = vmatprep.subr.bf16.mxu0 %v1209_v8  ;;  %1215 = vmatpush3.bf16.msra.mxu1 %v1782_v14  ;;  %s1834_s7 = sadd.s32 %s1100_s13, %s1741_s6  ;;  %s1846_s4 = sadd.s32 %s1522_s22, %s1104_s27 }
  0x69   : > { %1216 = vmatprep.subr.bf16.mxu1 %v1540_v7  ;;  %s1101_s5 = sshll.u32 %s1834_s7, 3  ;;  %s1105_s26 = sshll.u32 %s1846_s4, 3 }
  0x6a   : > { %s584_s14 = scalar_lea.vmem [#allocation2], %s1101_s5  ;;  %s687_s23 = scalar_lea.vmem %s1770_s20, %s1101_s5 [#allocation8] }
  0x6b   : > { %1212 = vmatpush3.bf16.msra.mxu0 %v1209_v8  ;;  %s692_s12 = scalar_lea.vmem [#allocation2], %s1105_s26  ;;  %s795_s8 = scalar_lea.vmem %s1770_s20, %s1105_s26 [#allocation8] }
  0x6c   : > { %1219 = vmatprep.subr.bf16.mxu0 %v1540_v7  ;;  %1218 = vmatpush3.bf16.msra.mxu1 %v1785_v15  ;;  %s799_s21 = scalar_lea.vmem [#allocation2], %s798_s2  ;;  %s1545_s24 = smov 96  }
  0x6d   : > { %1225 = vmatprep.subr.bf16.mxu1 %v1540_v7  ;;  %s932_s7 = sshll.u32 %s1770_s20, 4  ;;  %s903_s5 = scalar_lea.vmem %s1770_s20, %s798_s2 [#allocation8]  ;;  %s1875_s7 = int_to_ptr.vmem [resolvable:$true] %s932_s7 }
  0x6e   : > { %1156 = vmatmul.mubr.msk.f32.vlgmr.msra.gmra.mrb[0].mxu0 %vm359_vm1, %v345_v16  ;;  %s1412_s6 = scalar_lea.vmem %s1875_s7, 512  ;;  %p1977_p1 = scmp.ne.s32.totalorder %s1969_s9, 0 }
  0x6f   : > { %1158 = vmatprep.mubr.msk.f32.mxu0 %vm359_vm1, %v346_v17  ;;  %1221 = vmatpush3.bf16.msra.mxu0 %v1782_v14  ;;  %p1413_p4 = scmp.ne.s32.totalorder %s1875_s7, %s1412_s6  ;;  %s1546_s20 = smov [#allocation8]  }
  0x70   : > { %1170 = vmatmul.mubr.msk.f32.vlgmr.msra.gmra.mrb[0].mxu1 %vm359_vm1, %v465_v18  ;;  %1222 = vmatprep.subr.bf16.mxu0 %v1540_v7 }
  0x71   : > { %1227 = vmatpush3.bf16.msra.mxu1 %v1782_v14  ;;  %1191 = vmatprep.mubr.msk.f32.mxu1 %vm1541_vm2, %v1542_v10  ;;  %p1414_p2 = pnand %p1413_p4, %p1977_p1 }
  0x72   : > { %1159 = vmatmul.mubr.msk.f32.gmra.mrb[2].mxu0 %vm359_vm1, %v347_v19  ;;  %1228 = vmatprep.subr.bf16.mxu1 %v1540_v7 }
  0x73   : > { %1224 = vmatpush3.bf16.msra.mxu0 %v1785_v15  ;;  %1180 = vmatprep.mubr.msk.f32.mxu0 %vm1541_vm2, %v1542_v10  ;;  %p1415_p6 = pneg %p1414_p2 }
  0x74   : > { %1231 = vmatprep.subr.bf16.mxu0 %v1540_v7 }
  0x75   : > { %1230 = vmatpush3.bf16.msra.mxu1 %v1785_v15 }
 0x141   : > { %v1157_v21 = vpop.f32.mrb[0].mxu0 }
 0x142   : > { %v444_v22 = vadd.f32 %v1157_v21, %v1092_v20  ;;  %v438_v23 = vpop.f32.mrb[1].mxu0 }
 0x143   : > { %v439_v24 = vadd.f32 %v1092_v20, %v438_v23  ;;  %v540_v25 = vpop.f32.mrb[0].mxu1 }
 0x144   : > { %458 = vst [vmem:[#allocation2 + $0x8] sm:$0xff] %v444_v22  ;;  %v1171_v26 = vpop.f32.mrb[1].mxu1 }
 0x145   : > { %457 = vst [vmem:[#allocation2] sm:$0xff] %v439_v24  ;;  %v1160_v27 = vpop.f32.mrb[2].mxu0 }
 0x146   : > { %v454_v28 = vadd.f32 %v1160_v27, %v1092_v20  ;;  %v448_v29 = vpop.f32.mrb[3].mxu0 }
 0x147   : > { %v449_v30 = vadd.f32 %v1092_v20, %v448_v29 }
 0x148   : > { %460 = vst [vmem:[#allocation2 + $0x18] sm:$0xff] %v454_v28 }
 0x149   : > { %459 = vst [vmem:[#allocation2 + $0x10] sm:$0xff] %v449_v30 }
 0x150   : > { %v470_v31 = vld [vmem:[%s469_s28] sm:$0xff]  ;;  %s1113_s28 = sshll.u32 %s1522_s22, 3  ;;  %s1976_s22 = sand.u32 1, %s1498_s16  }
 0x151   : > { %v544_v32 = vadd.f32 %v540_v25, %v470_v31  ;;  %v585_v49 = vld [vmem:[%s584_s14] sm:$0xff] }
 0x152   : > { %v693_v3 = vld [vmem:[%s692_s12] sm:$0xff] }
 0x153   : > { %1350 = vtanh.f32 %v544_v32  ;;  %v1098_v35 = vmul.f32 -1.442695, %v544_v32  ;;  %v800_v21 = vld [vmem:[%s799_s21] sm:$0xff] }
 0x155   : > { %1352 = vpow2.f32 %v1098_v35 }
 0x15d   : > { %v1351_v33 = vpop.eup %1350 }
 0x15e   : > { %558 = vrot.lane.b32.xlu0 %v1351_v33, %s1543_s29 }
 0x15f   : > { %v1353_v36 = vpop.eup %1352 }
 0x160   : > { %v548_v37 = vadd.f32 1.0, %v1353_v36 }
 0x162   : > { %553 = vrot.lane.b32.xlu0 %v466_v34, %s1543_s29  ;;  %1354 = vrcp.f32 %v548_v37 }
 0x16c   : > { %v1355_v38 = vpop.eup %1354 }
 0x1d0   : > { %v559_v39 = vpop.permute.xlu0 %558 }
 0x1d1   : > { %v561_v40 = vmul.f32 %v1355_v38, %v559_v39 }
 0x1d3   : > { %563 = vrot.lane.b32.xlu1 %v561_v40, %s1543_s29 }
 0x1d4   : > { %v554_v41 = vpop.permute.xlu0 %553 }
 0x1d5   : > { %v556_v42 = vmul.f32 %v1355_v38, %v554_v41 }
 0x245   : > { %v564_v43 = vpop.permute.xlu1 %563 }
 0x246   : > { %v566_v44 = vadd.f32 %v564_v43, %v556_v42 }
 0x248   : > { %1356 = vtanh.f32 %v566_v44 }
 0x252   : > { %v1357_v45 = vpop.eup %1356 }
 0x253   : > { %569 = vrot.lane.b32.xlu1 %v1357_v45, %s1543_s29 }
 0x2c5   : > { %v570_v46 = vpop.permute.xlu1 %569 }
 0x2c6   : > { %v572_v47 = vmul.f32 %v1355_v38, %v570_v46 }
 0x2c8   : > { %574 = vrot.lane.b32.xlu0 %v572_v47, %s1544_s18 }
 0x33a   : > { %v575_v48 = vpop.permute.xlu0 %574 }
 0x33b   : > { %579 = vst.msk [vmem:[%s578_s10] sm:$0xff] %vm359_vm1, %v575_v48  ;;  %1181 = vmatmul.mubr.msk.f32.vlgmr.msra.gmra.mrb[4].mxu0 %vm359_vm1, %v575_v48  ;;  %s929_s10 = sadd.s32 %s1113_s28, %s1750_s30  ;;  %s1881_s30 = scalar_lea.sflag [#allocation7], %s1976_s22 }
 0x33c   : > { %1233 = vmatpush3.bf16.msra.mxu0 %v1782_v14  ;;  %1202 = vmatprep.mubr.msk.f32.mxu0 %vm1541_vm2, %v1542_v10  ;;  %s1114_s13 = sshll.u32 %s929_s10, 7 }
 0x33d   : > { %1234 = vmatprep.subr.bf16.mxu0 %v1540_v7 }
 0x340   : > { %1236 = vmatpush3.bf16.msra.mxu0 %v1785_v15 }
 0x40e   : > { %v654_v50 = vpop.f32.mrb[4].mxu0 }
 0x40f   : > { %v658_v51 = vadd.f32 %v654_v50, %v585_v49  ;;  %v1182_v52 = vpop.f32.mrb[5].mxu0 }
 0x411   : > { %1358 = vtanh.f32 %v658_v51  ;;  %v1103_v54 = vmul.f32 -1.442695, %v658_v51 }
 0x413   : > { %1360 = vpow2.f32 %v1103_v54 }
 0x41b   : > { %v1359_v53 = vpop.eup %1358 }
 0x41c   : > { %668 = vrot.lane.b32.xlu1 %v1359_v53, %s1543_s29 }
 0x41d   : > { %v1361_v55 = vpop.eup %1360 }
 0x41e   : > { %v662_v56 = vadd.f32 1.0, %v1361_v55 }
 0x420   : > { %1362 = vrcp.f32 %v662_v56 }
 0x42a   : > { %v1363_v57 = vpop.eup %1362 }
 0x42b   : > { %v666_v60 = vmul.f32 %v1363_v57, %v566_v44 }
 0x48e   : > { %v669_v58 = vpop.permute.xlu1 %668 }
 0x48f   : > { %v671_v59 = vmul.f32 %v1363_v57, %v669_v58 }
 0x491   : > { %673 = vrot.lane.b32.xlu0 %v671_v59, %s1543_s29 }
 0x503   : > { %v674_v61 = vpop.permute.xlu0 %673 }
 0x504   : > { %v676_v62 = vadd.f32 %v674_v61, %v666_v60 }
 0x506   : > { %1364 = vtanh.f32 %v676_v62 }
 0x510   : > { %v1365_v63 = vpop.eup %1364 }
 0x511   : > { %679 = vrot.lane.b32.xlu1 %v1365_v63, %s1543_s29 }
 0x583   : > { %v680_v0 = vpop.permute.xlu1 %679 }
 0x584   : > { %v682_v1 = vmul.f32 %v1363_v57, %v680_v0 }
 0x586   : > { %684 = vrot.lane.b32.xlu0 %v682_v1, %s1544_s18 }
 0x5f8   : > { %v685_v2 = vpop.permute.xlu0 %684 }
 0x5f9   : > { %688 = vst.msk [vmem:[%s687_s23] sm:$0xff] %vm359_vm1, %v685_v2  ;;  %1192 = vmatmul.mubr.msk.f32.vlgmr.msra.gmra.mrb[2].mxu1 %vm359_vm1, %v685_v2 }
 0x6cc   : > { %v762_v4 = vpop.f32.mrb[2].mxu1 }
 0x6cd   : > { %v766_v5 = vadd.f32 %v762_v4, %v693_v3  ;;  %v1193_v6 = vpop.f32.mrb[3].mxu1 }
 0x6cf   : > { %1366 = vtanh.f32 %v766_v5  ;;  %v1107_v8 = vmul.f32 -1.442695, %v766_v5 }
 0x6d1   : > { %1368 = vpow2.f32 %v1107_v8 }
 0x6d9   : > { %v1367_v7 = vpop.eup %1366 }
 0x6da   : > { %776 = vrot.lane.b32.xlu1 %v1367_v7, %s1543_s29 }
 0x6db   : > { %v1369_v9 = vpop.eup %1368 }
 0x6dc   : > { %v770_v10 = vadd.f32 1.0, %v1369_v9 }
 0x6de   : > { %1370 = vrcp.f32 %v770_v10 }
 0x6e8   : > { %v1371_v11 = vpop.eup %1370 }
 0x6e9   : > { %v774_v14 = vmul.f32 %v1371_v11, %v676_v62 }
 0x74c   : > { %v777_v12 = vpop.permute.xlu1 %776 }
 0x74d   : > { %v779_v13 = vmul.f32 %v1371_v11, %v777_v12 }
 0x74f   : > { %781 = vrot.lane.b32.xlu0 %v779_v13, %s1543_s29 }
 0x7c1   : > { %v782_v15 = vpop.permute.xlu0 %781 }
 0x7c2   : > { %v784_v16 = vadd.f32 %v782_v15, %v774_v14 }
 0x7c4   : > { %1372 = vtanh.f32 %v784_v16 }
 0x7ce   : > { %v1373_v17 = vpop.eup %1372 }
 0x7cf   : > { %787 = vrot.lane.b32.xlu1 %v1373_v17, %s1543_s29 }
 0x841   : > { %v788_v18 = vpop.permute.xlu1 %787 }
 0x842   : > { %v790_v19 = vmul.f32 %v1371_v11, %v788_v18 }
 0x844   : > { %792 = vrot.lane.b32.xlu0 %v790_v19, %s1544_s18 }
 0x8b6   : > { %v793_v20 = vpop.permute.xlu0 %792 }
 0x8b7   : > { %796 = vst.msk [vmem:[%s795_s8] sm:$0xff] %vm359_vm1, %v793_v20  ;;  %1203 = vmatmul.mubr.msk.f32.vlgmr.msra.gmra.mrb[6].mxu0 %vm359_vm1, %v793_v20 }
 0x98a   : > { %v869_v22 = vpop.f32.mrb[6].mxu0 }
 0x98b   : > { %v873_v23 = vadd.f32 %v869_v22, %v800_v21  ;;  %v1204_v24 = vpop.f32.mrb[7].mxu0 }
 0x98d   : > { %1374 = vtanh.f32 %v873_v23  ;;  %v1109_v26 = vmul.f32 -1.442695, %v873_v23 }
 0x98f   : > { %1376 = vpow2.f32 %v1109_v26 }
 0x997   : > { %v1375_v25 = vpop.eup %1374 }
 0x998   : > { %883 = vrot.lane.b32.xlu1 %v1375_v25, %s1543_s29 }
 0x999   : > { %v1377_v27 = vpop.eup %1376 }
 0x99a   : > { %v877_v28 = vadd.f32 1.0, %v1377_v27 }
 0x99c   : > { %1378 = vrcp.f32 %v877_v28 }
 0x9a6   : > { %v1379_v29 = vpop.eup %1378 }
 0x9a7   : > { %v881_v32 = vmul.f32 %v1379_v29, %v784_v16 }
 0xa0a   : > { %v884_v30 = vpop.permute.xlu1 %883 }
 0xa0b   : > { %v886_v31 = vmul.f32 %v1379_v29, %v884_v30 }
 0xa0d   : > { %888 = vrot.lane.b32.xlu0 %v886_v31, %s1543_s29 }
 0xa7f   : > { %v889_v33 = vpop.permute.xlu0 %888 }
 0xa80   : > { %v891_v34 = vadd.f32 %v889_v33, %v881_v32 }
 0xa82   : > { %1380 = vtanh.f32 %v891_v34 }
 0xa8c   : > { %v1381_v35 = vpop.eup %1380 }
 0xa8d   : > { %894 = vrot.lane.b32.xlu1 %v1381_v35, %s1543_s29  ;;  %s1975_s29 = sld [smem:[#allocation19_spill]] }
 0xa91   : > { %907 = vrot.lane.b32.xlu1 %v891_v34, %s1545_s24 }
 0xa93   : > { %s1873_s27 = scalar_lea.hbm %s1975_s29, %s1114_s13 }
 0xaff   : > { %v895_v36 = vpop.permute.xlu1 %894 }
 0xb00   : > { %v897_v37 = vmul.f32 %v1379_v29, %v895_v36 }
 0xb02   : > { %899 = vrot.lane.b32.xlu0 %v897_v37, %s1544_s18  ;;  %s1416_s18 = sshll.u32 %s1546_s20, 4  ;;  %s1417_s18 = int_to_ptr.vmem [resolvable:$false] %s1416_s18 }
 0xb03   : > { %v908_v38 = vpop.permute.xlu1 %907  ;;  %s1418_s4 = scalar_lea.vmem %s1417_s18, 1024  ;;  %p1419_p9 = scmp.lt.s32.totalorder %s1875_s7, %s1417_s18 }
 0xb04   : > { %910 = vst.msk [vmem:[#allocation4] sm:$0xff] %vm359_vm1, %v908_v38  ;;  %p1420_p3 = scmp.lt.s32.totalorder %s1418_s4, %s1412_s6 }
 0xb06   : > { %p1421_p11 = por %p1420_p3, %p1419_p9 }
 0xb08   : > { %p1422_p12 = pnand %p1421_p11, %p1415_p6 }
 0xb74   : > { %v900_v39 = vpop.permute.xlu0 %899 }
 0xb75   : > { %904 = vst.msk [vmem:[%s903_s5] sm:$0xff] %vm359_vm1, %v900_v39  ;;  %905 = vst.msk [vmem:[#allocation3] sm:$0xff] %vm359_vm1, %v900_v39 }
 0xb76   : > { %1425 = shalt.err (!%p1422_p12)
}
 0xb77   : > { %s1426_s26 = scalar_lea.hbm %s1873_s27, 512  ;;  %s1430_s2 = scalar_lea.hbm %s1975_s29, 2048 }
 0xb78   : > { %p1427_p5 = scmp.ne.s32.totalorder %s1873_s27, %s1426_s26  ;;  %p1431_p13 = scmp.lt.u32.totalorder %s1873_s27, %s1975_s29 }
 0xb79   : > { %p1432_p7 = scmp.lt.u32.totalorder %s1430_s2, %s1426_s26  ;;  %p1434_p4 = scmp.lt.u32.totalorder %s1426_s26, %s1873_s27 }
 0xb7a   : > { %p1428_p8 = pnand %p1427_p5, %p1977_p1 }
 0xb7b   : > { %p1433_p0 = por %p1432_p7, %p1431_p13 }
 0xb7c   : > { %p1429_p10 = pneg %p1428_p8 }
 0xb7d   : > { %p1435_p2 = por %p1434_p4, %p1433_p0 }
 0xb7f   : > { %p1436_p6 = pnand %p1435_p2, %p1429_p10 }
 0xb81   : > { %1439 = shalt.err (!%p1436_p6)
}
 0xb82   : > { %s1547_s28 = smov 128   ;;  %s1548_s10 = smov 8  }
 0xb83   : > { %1239 = dma.vmem_to_hbm [thread:$0]  (%p1977_p1), %s1875_s7, 512, %s1873_s27, %s1881_s30, %s1547_s28, %s1547_s28, %s1548_s10  }
 0xb84 PF: > { %p1250_p9 = scmp.ge.s32.totalorder %s1534_s25, 2  ;;  %s947_s13 = sand.u32 1, %s1494_s15  }
 0xb85   : > { %p1978_p3 = scmp.ne.s32.totalorder %s1970_s11, 0  ;;  %s948_s5 = scalar_lea.sflag [#allocation7], %s947_s13 }
 0xb87   : > { %p1246_p11 = pnand %p1250_p9, %p1978_p3 }
 0xb89   : > { %1489 = dma.done.wait (!%p1246_p11), %s948_s5, 512  }
 0xb8a   : > { %1491 = vsyncadd (!%p1246_p11), %s948_s5, 4294966784  ;;  %s20_s25 = sadd.s32 1, %s1534_s25   ;;  %s1979_s9 = sld [smem:[#allocation11_spill]] }
 0xb8b   : > { %p17_p12 = scmp.ge.s32.totalorder %s20_s25, 6   ;;  %s1980_s20 = sld [smem:[#allocation16_spill]] }
 0xb8c   : > { %s1981_s21 = sld [smem:[#allocation12_spill]]  ;;  %s1982_s22 = sld [smem:[#allocation13_spill]] }
 0xb8d   : > { %s1983_s23 = sld [smem:[#allocation14_spill]]  ;;  %s1984_s24 = sld [smem:[#allocation15_spill]] }
 0xb8e   : > { %s1985_s15 = smov %s1498_s16  ;;  %s1986_s16 = smov %s1502_s17 }
 0xb8f   : > { %s1987_s17 = smov %s1684_s0  ;;  %s1988_s18 = smov %s1510_s19 }
 0xb90   : > { %s1989_s19 = smov %s1979_s9  ;;  %19 = sbr.rel (!%p17_p12) target bundleno = 13 (0xd), region = 102 }
 0xb97   :  { %953 = vsyncpa [#allocation6], 1 }
 0xb98   :  { %955 = vsyncpa [#allocation6 + $0x1], 1 }
 0xb99   :  { %956 = vsyncpa [#allocation7], 1 }
 0xb9a   :  { %958 = vsyncpa [#allocation7 + $0x1], 1 }

</bundles_post_ra>
